<compile_context>
chip_gen: v7x
topology: tpu7x:2x2x1
jax: 0.10.0
libtpu: 0.0.40
codegen_flags: <defaults>
</compile_context>

<pallas_src>
import functools

import jax
import jax.numpy as jnp
from jax import lax
from jax.experimental import pallas as pl
from jax.experimental.pallas import tpu as pltpu


def _fused_two_conv_kernel(
    x_ref, w1_ref, b1_ref, w2_ref, b2_ref, o_ref,
    *, c1_in, c1_out, kh1, kw1, c2_out, kh2, kw2,
):
    """conv2(conv1(x)) fused in one kernel body (stride 1, VALID, f32).

    x_ref  : (N, C1in, H, W)            VMEM
    w1_ref : (C1out*C1in*KH1*KW1,)      SMEM flat, row-major (co, ci, kh, kw)
    b1_ref : (C1out,)                   SMEM
    w2_ref : (C2out*C1out*KH2*KW2,)     SMEM flat, row-major (co, ci, kh, kw)
    b2_ref : (C2out,)                   SMEM
    o_ref  : (N, C2out, Ho, Wo)         VMEM
    """
    n, _, h, w = x_ref.shape
    h1, w1d = h - kh1 + 1, w - kw1 + 1        # conv1 output spatial dims
    ho, wo = h1 - kh2 + 1, w1d - kw2 + 1      # conv2 output spatial dims

    x = x_ref[...]                            # already f32, no astype needed

    # ---- conv1: intermediate kept purely as in-kernel values (no HBM) ----
    y1 = []
    for co in range(c1_out):
        acc = jnp.full((n, h1, w1d), b1_ref[co], dtype=jnp.float32)
        for ci in range(c1_in):
            for i in range(kh1):
                for j in range(kw1):
                    widx = ((co * c1_in + ci) * kh1 + i) * kw1 + j  # static
                    acc = acc + x[:, ci, i:i + h1, j:j + w1d] * w1_ref[widx]
        y1.append(acc)

    # ---- conv2 over the local intermediate; direct per-channel stores ----
    for co in range(c2_out):
        acc = jnp.full((n, ho, wo), b2_ref[co], dtype=jnp.float32)
        for ci in range(c1_out):
            for i in range(kh2):
                for j in range(kw2):
                    widx = ((co * c1_out + ci) * kh2 + i) * kw2 + j  # static
                    acc = acc + y1[ci][:, i:i + ho, j:j + wo] * w2_ref[widx]
        o_ref[:, co, :, :] = acc.astype(o_ref.dtype)


def fused_two_conv(x, w1, b1, w2, b2):
    """x: (N, C1in, H, W) f32; w1: (C1out, C1in, KH1, KW1); w2: (C2out, C1out, KH2, KW2)."""
    n, c1_in, h, w = x.shape
    c1_out, c1_in_w, kh1, kw1 = w1.shape
    c2_out, c1_out_w, kh2, kw2 = w2.shape
    assert c1_in == c1_in_w and c1_out == c1_out_w

    ho = h - kh1 + 1 - kh2 + 1
    wo = w - kw1 + 1 - kw2 + 1

    kernel = functools.partial(
        _fused_two_conv_kernel,
        c1_in=c1_in, c1_out=c1_out, kh1=kh1, kw1=kw1,
        c2_out=c2_out, kh2=kh2, kw2=kw2,
    )
    return pl.pallas_call(
        kernel,
        out_shape=jax.ShapeDtypeStruct((n, c2_out, ho, wo), jnp.float32),
        in_specs=[
            pl.BlockSpec(memory_space=pltpu.MemorySpace.VMEM),   # x
            pl.BlockSpec(memory_space=pltpu.MemorySpace.SMEM),   # w1 flat
            pl.BlockSpec(memory_space=pltpu.MemorySpace.SMEM),   # b1
            pl.BlockSpec(memory_space=pltpu.MemorySpace.SMEM),   # w2 flat
            pl.BlockSpec(memory_space=pltpu.MemorySpace.SMEM),   # b2
        ],
        out_specs=pl.BlockSpec(memory_space=pltpu.MemorySpace.VMEM),
    )(x, w1.reshape(-1), b1, w2.reshape(-1), b2)


def device_checking_model_forward(x, params):
    """Pallas equivalent of DeviceCheckingModel.forward (device='tpu')."""
    w1, b1, w2, b2 = params
    # Mirrors `assert self.original_device in str(param.device)` (host-side check).
    for p in (w1, b1, w2, b2):
        assert all(d.platform == jax.default_backend() for d in p.devices())
    return fused_two_conv(x, w1, b1, w2, b2)   # (N, 1, H-3, W-3)


def make_params():
    # Deterministic init as in NNCF's create_conv(weight_init, bias_init).
    w1 = jnp.full((2, 1, 2, 2), -1.0, dtype=jnp.float32)
    b1 = jnp.full((2,), -2.0, dtype=jnp.float32)
    w2 = jnp.full((1, 2, 3, 3), 0.0, dtype=jnp.float32)
    b2 = jnp.full((1,), 0.0, dtype=jnp.float32)
    return tuple(jax.device_put(p) for p in (w1, b1, w2, b2))


def reference_forward(x, params):
    w1, b1, w2, b2 = params
    dn = ("NCHW", "OIHW", "NCHW")
    y = lax.conv_general_dilated(x, w1, (1, 1), "VALID", dimension_numbers=dn)
    y = y + b1[None, :, None, None]
    y = lax.conv_general_dilated(y, w2, (1, 1), "VALID", dimension_numbers=dn)
    y = y + b2[None, :, None, None]
    return y


if __name__ == "__main__":
    key = jax.random.PRNGKey(0)
    x = jax.random.normal(key, (2, 1, 16, 16), dtype=jnp.float32)

    # 1) Model-spec parameters (w2 = 0, so output is exactly zero).
    params = make_params()
    out = jax.block_until_ready(device_checking_model_forward(x, params))
    ref = jax.block_until_ready(reference_forward(x, params))
    assert out.shape == (2, 1, 13, 13), out.shape
    assert jnp.allclose(out, ref, atol=1e-5, rtol=1e-5)

    # 2) Non-degenerate parameters to actually exercise the fused conv math.
    k1, k2, k3, k4 = jax.random.split(jax.random.PRNGKey(1), 4)
    rnd_params = (
        jax.random.normal(k1, (2, 1, 2, 2), dtype=jnp.float32),
        jax.random.normal(k2, (2,), dtype=jnp.float32),
        jax.random.normal(k3, (1, 2, 3, 3), dtype=jnp.float32),
        jax.random.normal(k4, (1,), dtype=jnp.float32),
    )
    rnd_params = tuple(jax.device_put(p) for p in rnd_params)
    out2 = jax.block_until_ready(device_checking_model_forward(x, rnd_params))
    ref2 = jax.block_until_ready(reference_forward(x, rnd_params))
    assert jnp.allclose(out2, ref2, atol=1e-4, rtol=1e-4)

    print("KERNEL_OK")
</pallas_src>

<mosaic_0001>
module attributes {stable_mosaic.version = 11 : i64} {
  func.func @_fused_two_conv_kernel(%arg0: memref<2x1x16x16xf32, #tpu.memory_space<vmem>>, %arg1: memref<8xf32, #tpu.memory_space<smem>>, %arg2: memref<2xf32, #tpu.memory_space<smem>>, %arg3: memref<18xf32, #tpu.memory_space<smem>>, %arg4: memref<1xf32, #tpu.memory_space<smem>>, %arg5: memref<2x1x13x13xf32, #tpu.memory_space<vmem>>) attributes {dimension_semantics = [], scalar_prefetch = 0 : i64, scratch_operands = 0 : i64, tpu.core_type = #tpu.core_type<tc>} {
    %c0 = arith.constant 0 : index
    %c0_0 = arith.constant 0 : index
    %c0_1 = arith.constant 0 : index
    %c0_2 = arith.constant 0 : index
    %0 = vector.load %arg0[%c0, %c0_0, %c0_1, %c0_2] : memref<2x1x16x16xf32, #tpu.memory_space<vmem>>, vector<2x1x16x16xf32>
    %c0_3 = arith.constant 0 : index
    %1 = memref.load %arg2[%c0_3] : memref<2xf32, #tpu.memory_space<smem>>
    %2 = vector.broadcast %1 : f32 to vector<2x15x15xf32>
    %3 = vector.extract_strided_slice %0 {offsets = [0, 0, 0, 0], sizes = [2, 1, 15, 15], strides = [1, 1, 1, 1]} : vector<2x1x16x16xf32> to vector<2x1x15x15xf32>
    %4 = vector.shape_cast %3 : vector<2x1x15x15xf32> to vector<2x15x15xf32>
    %c0_4 = arith.constant 0 : index
    %5 = memref.load %arg1[%c0_4] : memref<8xf32, #tpu.memory_space<smem>>
    %6 = vector.broadcast %5 : f32 to vector<2x15x15xf32>
    %7 = arith.mulf %4, %6 : vector<2x15x15xf32>
    %8 = arith.addf %2, %7 : vector<2x15x15xf32>
    %9 = vector.extract_strided_slice %0 {offsets = [0, 0, 0, 1], sizes = [2, 1, 15, 15], strides = [1, 1, 1, 1]} : vector<2x1x16x16xf32> to vector<2x1x15x15xf32>
    %10 = vector.shape_cast %9 : vector<2x1x15x15xf32> to vector<2x15x15xf32>
    %c1 = arith.constant 1 : index
    %11 = memref.load %arg1[%c1] : memref<8xf32, #tpu.memory_space<smem>>
    %12 = vector.broadcast %11 : f32 to vector<2x15x15xf32>
    %13 = arith.mulf %10, %12 : vector<2x15x15xf32>
    %14 = arith.addf %8, %13 : vector<2x15x15xf32>
    %15 = vector.extract_strided_slice %0 {offsets = [0, 0, 1, 0], sizes = [2, 1, 15, 15], strides = [1, 1, 1, 1]} : vector<2x1x16x16xf32> to vector<2x1x15x15xf32>
    %16 = vector.shape_cast %15 : vector<2x1x15x15xf32> to vector<2x15x15xf32>
    %c2 = arith.constant 2 : index
    %17 = memref.load %arg1[%c2] : memref<8xf32, #tpu.memory_space<smem>>
    %18 = vector.broadcast %17 : f32 to vector<2x15x15xf32>
    %19 = arith.mulf %16, %18 : vector<2x15x15xf32>
    %20 = arith.addf %14, %19 : vector<2x15x15xf32>
    %21 = vector.extract_strided_slice %0 {offsets = [0, 0, 1, 1], sizes = [2, 1, 15, 15], strides = [1, 1, 1, 1]} : vector<2x1x16x16xf32> to vector<2x1x15x15xf32>
    %22 = vector.shape_cast %21 : vector<2x1x15x15xf32> to vector<2x15x15xf32>
    %c3 = arith.constant 3 : index
    %23 = memref.load %arg1[%c3] : memref<8xf32, #tpu.memory_space<smem>>
    %24 = vector.broadcast %23 : f32 to vector<2x15x15xf32>
    %25 = arith.mulf %22, %24 : vector<2x15x15xf32>
    %26 = arith.addf %20, %25 : vector<2x15x15xf32>
    %c1_5 = arith.constant 1 : index
    %27 = memref.load %arg2[%c1_5] : memref<2xf32, #tpu.memory_space<smem>>
    %28 = vector.broadcast %27 : f32 to vector<2x15x15xf32>
    %29 = vector.extract_strided_slice %0 {offsets = [0, 0, 0, 0], sizes = [2, 1, 15, 15], strides = [1, 1, 1, 1]} : vector<2x1x16x16xf32> to vector<2x1x15x15xf32>
    %30 = vector.shape_cast %29 : vector<2x1x15x15xf32> to vector<2x15x15xf32>
    %c4 = arith.constant 4 : index
    %31 = memref.load %arg1[%c4] : memref<8xf32, #tpu.memory_space<smem>>
    %32 = vector.broadcast %31 : f32 to vector<2x15x15xf32>
    %33 = arith.mulf %30, %32 : vector<2x15x15xf32>
    %34 = arith.addf %28, %33 : vector<2x15x15xf32>
    %35 = vector.extract_strided_slice %0 {offsets = [0, 0, 0, 1], sizes = [2, 1, 15, 15], strides = [1, 1, 1, 1]} : vector<2x1x16x16xf32> to vector<2x1x15x15xf32>
    %36 = vector.shape_cast %35 : vector<2x1x15x15xf32> to vector<2x15x15xf32>
    %c5 = arith.constant 5 : index
    %37 = memref.load %arg1[%c5] : memref<8xf32, #tpu.memory_space<smem>>
    %38 = vector.broadcast %37 : f32 to vector<2x15x15xf32>
    %39 = arith.mulf %36, %38 : vector<2x15x15xf32>
    %40 = arith.addf %34, %39 : vector<2x15x15xf32>
    %41 = vector.extract_strided_slice %0 {offsets = [0, 0, 1, 0], sizes = [2, 1, 15, 15], strides = [1, 1, 1, 1]} : vector<2x1x16x16xf32> to vector<2x1x15x15xf32>
    %42 = vector.shape_cast %41 : vector<2x1x15x15xf32> to vector<2x15x15xf32>
    %c6 = arith.constant 6 : index
    %43 = memref.load %arg1[%c6] : memref<8xf32, #tpu.memory_space<smem>>
    %44 = vector.broadcast %43 : f32 to vector<2x15x15xf32>
    %45 = arith.mulf %42, %44 : vector<2x15x15xf32>
    %46 = arith.addf %40, %45 : vector<2x15x15xf32>
    %47 = vector.extract_strided_slice %0 {offsets = [0, 0, 1, 1], sizes = [2, 1, 15, 15], strides = [1, 1, 1, 1]} : vector<2x1x16x16xf32> to vector<2x1x15x15xf32>
    %48 = vector.shape_cast %47 : vector<2x1x15x15xf32> to vector<2x15x15xf32>
    %c7 = arith.constant 7 : index
    %49 = memref.load %arg1[%c7] : memref<8xf32, #tpu.memory_space<smem>>
    %50 = vector.broadcast %49 : f32 to vector<2x15x15xf32>
    %51 = arith.mulf %48, %50 : vector<2x15x15xf32>
    %52 = arith.addf %46, %51 : vector<2x15x15xf32>
    %c0_6 = arith.constant 0 : index
    %53 = memref.load %arg4[%c0_6] : memref<1xf32, #tpu.memory_space<smem>>
    %54 = vector.broadcast %53 : f32 to vector<2x13x13xf32>
    %55 = vector.extract_strided_slice %26 {offsets = [0, 0, 0], sizes = [2, 13, 13], strides = [1, 1, 1]} : vector<2x15x15xf32> to vector<2x13x13xf32>
    %c0_7 = arith.constant 0 : index
    %56 = memref.load %arg3[%c0_7] : memref<18xf32, #tpu.memory_space<smem>>
    %57 = vector.broadcast %56 : f32 to vector<2x13x13xf32>
    %58 = arith.mulf %55, %57 : vector<2x13x13xf32>
    %59 = arith.addf %54, %58 : vector<2x13x13xf32>
    %60 = vector.extract_strided_slice %26 {offsets = [0, 0, 1], sizes = [2, 13, 13], strides = [1, 1, 1]} : vector<2x15x15xf32> to vector<2x13x13xf32>
    %c1_8 = arith.constant 1 : index
    %61 = memref.load %arg3[%c1_8] : memref<18xf32, #tpu.memory_space<smem>>
    %62 = vector.broadcast %61 : f32 to vector<2x13x13xf32>
    %63 = arith.mulf %60, %62 : vector<2x13x13xf32>
    %64 = arith.addf %59, %63 : vector<2x13x13xf32>
    %65 = vector.extract_strided_slice %26 {offsets = [0, 0, 2], sizes = [2, 13, 13], strides = [1, 1, 1]} : vector<2x15x15xf32> to vector<2x13x13xf32>
    %c2_9 = arith.constant 2 : index
    %66 = memref.load %arg3[%c2_9] : memref<18xf32, #tpu.memory_space<smem>>
    %67 = vector.broadcast %66 : f32 to vector<2x13x13xf32>
    %68 = arith.mulf %65, %67 : vector<2x13x13xf32>
    %69 = arith.addf %64, %68 : vector<2x13x13xf32>
    %70 = vector.extract_strided_slice %26 {offsets = [0, 1, 0], sizes = [2, 13, 13], strides = [1, 1, 1]} : vector<2x15x15xf32> to vector<2x13x13xf32>
    %c3_10 = arith.constant 3 : index
    %71 = memref.load %arg3[%c3_10] : memref<18xf32, #tpu.memory_space<smem>>
    %72 = vector.broadcast %71 : f32 to vector<2x13x13xf32>
    %73 = arith.mulf %70, %72 : vector<2x13x13xf32>
    %74 = arith.addf %69, %73 : vector<2x13x13xf32>
    %75 = vector.extract_strided_slice %26 {offsets = [0, 1, 1], sizes = [2, 13, 13], strides = [1, 1, 1]} : vector<2x15x15xf32> to vector<2x13x13xf32>
    %c4_11 = arith.constant 4 : index
    %76 = memref.load %arg3[%c4_11] : memref<18xf32, #tpu.memory_space<smem>>
    %77 = vector.broadcast %76 : f32 to vector<2x13x13xf32>
    %78 = arith.mulf %75, %77 : vector<2x13x13xf32>
    %79 = arith.addf %74, %78 : vector<2x13x13xf32>
    %80 = vector.extract_strided_slice %26 {offsets = [0, 1, 2], sizes = [2, 13, 13], strides = [1, 1, 1]} : vector<2x15x15xf32> to vector<2x13x13xf32>
    %c5_12 = arith.constant 5 : index
    %81 = memref.load %arg3[%c5_12] : memref<18xf32, #tpu.memory_space<smem>>
    %82 = vector.broadcast %81 : f32 to vector<2x13x13xf32>
    %83 = arith.mulf %80, %82 : vector<2x13x13xf32>
    %84 = arith.addf %79, %83 : vector<2x13x13xf32>
    %85 = vector.extract_strided_slice %26 {offsets = [0, 2, 0], sizes = [2, 13, 13], strides = [1, 1, 1]} : vector<2x15x15xf32> to vector<2x13x13xf32>
    %c6_13 = arith.constant 6 : index
    %86 = memref.load %arg3[%c6_13] : memref<18xf32, #tpu.memory_space<smem>>
    %87 = vector.broadcast %86 : f32 to vector<2x13x13xf32>
    %88 = arith.mulf %85, %87 : vector<2x13x13xf32>
    %89 = arith.addf %84, %88 : vector<2x13x13xf32>
    %90 = vector.extract_strided_slice %26 {offsets = [0, 2, 1], sizes = [2, 13, 13], strides = [1, 1, 1]} : vector<2x15x15xf32> to vector<2x13x13xf32>
    %c7_14 = arith.constant 7 : index
    %91 = memref.load %arg3[%c7_14] : memref<18xf32, #tpu.memory_space<smem>>
    %92 = vector.broadcast %91 : f32 to vector<2x13x13xf32>
    %93 = arith.mulf %90, %92 : vector<2x13x13xf32>
    %94 = arith.addf %89, %93 : vector<2x13x13xf32>
    %95 = vector.extract_strided_slice %26 {offsets = [0, 2, 2], sizes = [2, 13, 13], strides = [1, 1, 1]} : vector<2x15x15xf32> to vector<2x13x13xf32>
    %c8 = arith.constant 8 : index
    %96 = memref.load %arg3[%c8] : memref<18xf32, #tpu.memory_space<smem>>
    %97 = vector.broadcast %96 : f32 to vector<2x13x13xf32>
    %98 = arith.mulf %95, %97 : vector<2x13x13xf32>
    %99 = arith.addf %94, %98 : vector<2x13x13xf32>
    %100 = vector.extract_strided_slice %52 {offsets = [0, 0, 0], sizes = [2, 13, 13], strides = [1, 1, 1]} : vector<2x15x15xf32> to vector<2x13x13xf32>
    %c9 = arith.constant 9 : index
    %101 = memref.load %arg3[%c9] : memref<18xf32, #tpu.memory_space<smem>>
    %102 = vector.broadcast %101 : f32 to vector<2x13x13xf32>
    %103 = arith.mulf %100, %102 : vector<2x13x13xf32>
    %104 = arith.addf %99, %103 : vector<2x13x13xf32>
    %105 = vector.extract_strided_slice %52 {offsets = [0, 0, 1], sizes = [2, 13, 13], strides = [1, 1, 1]} : vector<2x15x15xf32> to vector<2x13x13xf32>
    %c10 = arith.constant 10 : index
    %106 = memref.load %arg3[%c10] : memref<18xf32, #tpu.memory_space<smem>>
    %107 = vector.broadcast %106 : f32 to vector<2x13x13xf32>
    %108 = arith.mulf %105, %107 : vector<2x13x13xf32>
    %109 = arith.addf %104, %108 : vector<2x13x13xf32>
    %110 = vector.extract_strided_slice %52 {offsets = [0, 0, 2], sizes = [2, 13, 13], strides = [1, 1, 1]} : vector<2x15x15xf32> to vector<2x13x13xf32>
    %c11 = arith.constant 11 : index
    %111 = memref.load %arg3[%c11] : memref<18xf32, #tpu.memory_space<smem>>
    %112 = vector.broadcast %111 : f32 to vector<2x13x13xf32>
    %113 = arith.mulf %110, %112 : vector<2x13x13xf32>
    %114 = arith.addf %109, %113 : vector<2x13x13xf32>
    %115 = vector.extract_strided_slice %52 {offsets = [0, 1, 0], sizes = [2, 13, 13], strides = [1, 1, 1]} : vector<2x15x15xf32> to vector<2x13x13xf32>
    %c12 = arith.constant 12 : index
    %116 = memref.load %arg3[%c12] : memref<18xf32, #tpu.memory_space<smem>>
    %117 = vector.broadcast %116 : f32 to vector<2x13x13xf32>
    %118 = arith.mulf %115, %117 : vector<2x13x13xf32>
    %119 = arith.addf %114, %118 : vector<2x13x13xf32>
    %120 = vector.extract_strided_slice %52 {offsets = [0, 1, 1], sizes = [2, 13, 13], strides = [1, 1, 1]} : vector<2x15x15xf32> to vector<2x13x13xf32>
    %c13 = arith.constant 13 : index
    %121 = memref.load %arg3[%c13] : memref<18xf32, #tpu.memory_space<smem>>
    %122 = vector.broadcast %121 : f32 to vector<2x13x13xf32>
    %123 = arith.mulf %120, %122 : vector<2x13x13xf32>
    %124 = arith.addf %119, %123 : vector<2x13x13xf32>
    %125 = vector.extract_strided_slice %52 {offsets = [0, 1, 2], sizes = [2, 13, 13], strides = [1, 1, 1]} : vector<2x15x15xf32> to vector<2x13x13xf32>
    %c14 = arith.constant 14 : index
    %126 = memref.load %arg3[%c14] : memref<18xf32, #tpu.memory_space<smem>>
    %127 = vector.broadcast %126 : f32 to vector<2x13x13xf32>
    %128 = arith.mulf %125, %127 : vector<2x13x13xf32>
    %129 = arith.addf %124, %128 : vector<2x13x13xf32>
    %130 = vector.extract_strided_slice %52 {offsets = [0, 2, 0], sizes = [2, 13, 13], strides = [1, 1, 1]} : vector<2x15x15xf32> to vector<2x13x13xf32>
    %c15 = arith.constant 15 : index
    %131 = memref.load %arg3[%c15] : memref<18xf32, #tpu.memory_space<smem>>
    %132 = vector.broadcast %131 : f32 to vector<2x13x13xf32>
    %133 = arith.mulf %130, %132 : vector<2x13x13xf32>
    %134 = arith.addf %129, %133 : vector<2x13x13xf32>
    %135 = vector.extract_strided_slice %52 {offsets = [0, 2, 1], sizes = [2, 13, 13], strides = [1, 1, 1]} : vector<2x15x15xf32> to vector<2x13x13xf32>
    %c16 = arith.constant 16 : index
    %136 = memref.load %arg3[%c16] : memref<18xf32, #tpu.memory_space<smem>>
    %137 = vector.broadcast %136 : f32 to vector<2x13x13xf32>
    %138 = arith.mulf %135, %137 : vector<2x13x13xf32>
    %139 = arith.addf %134, %138 : vector<2x13x13xf32>
    %140 = vector.extract_strided_slice %52 {offsets = [0, 2, 2], sizes = [2, 13, 13], strides = [1, 1, 1]} : vector<2x15x15xf32> to vector<2x13x13xf32>
    %c17 = arith.constant 17 : index
    %141 = memref.load %arg3[%c17] : memref<18xf32, #tpu.memory_space<smem>>
    %142 = vector.broadcast %141 : f32 to vector<2x13x13xf32>
    %143 = arith.mulf %140, %142 : vector<2x13x13xf32>
    %144 = arith.addf %139, %143 : vector<2x13x13xf32>
    %c0_15 = arith.constant 0 : index
    %c0_16 = arith.constant 0 : index
    %c0_17 = arith.constant 0 : index
    %c0_18 = arith.constant 0 : index
    %145 = vector.load %arg5[%c0_15, %c0_16, %c0_17, %c0_18] : memref<2x1x13x13xf32, #tpu.memory_space<vmem>>, vector<2x1x13x13xf32>
    %146 = vector.shape_cast %145 : vector<2x1x13x13xf32> to vector<2x13x13xf32>
    %147 = vector.shape_cast %144 : vector<2x13x13xf32> to vector<2x1x13x13xf32>
    tpu.vector_store %arg5[%c0_15, %c0_16, %c0_17, %c0_18], %147 {strides = array<i32>} : memref<2x1x13x13xf32, #tpu.memory_space<vmem>>, vector<2x1x13x13xf32>,
    return
  }
}

</mosaic_0001>

<bundles_post_ra>
// kernel: tpu_custom_call.1
= control target key start
LH: loop header
LB: loop body
LE: loop exit
PB: predicated region body
PF: predicated region fallthrough
CT: control target
= control target key end

     0   :  { %11 = vsyncpa [#allocation4], 0  ;;  %s1488_s0 = inlined_call_operand.hbm [shape: f32[2,1,16,16], index: 0, kind: input, shape index: {}]   ;;  %s1489_s1 = inlined_call_operand.vmem [shape: f32[8], index: 1, kind: input, shape index: {}]   ;;  %s1490_s2 = inlined_call_operand.vmem [shape: f32[2], index: 2, kind: input, shape index: {}]   ;;  %s1491_s3 = inlined_call_operand.vmem [shape: f32[18], index: 3, kind: input, shape index: {}]   ;;  %s1492_s4 = inlined_call_operand.<no memory space> [shape: f32[1], index: 4, kind: input, shape index: {}]   ;;  %s1493_s5 = inlined_call_operand.vmem [shape: f32[2,1,13,13], index: 5, kind: output, shape index: {}]  }
   0x1   :  { %12 = vsyncpa [#allocation5], 0 }
   0x2   :  { %13 = vsyncpa [#allocation8], 0  ;;  %s42_s20 = sshll.u32 %s1490_s2, 4  ;;  %s43_s20 = int_to_ptr.vmem [resolvable:$true] %s42_s20 }
   0x3   :  { %s789_s21 = scalar_lea.vmem %s43_s20, 16  ;;  %p794_p1 = scmp.lt.s32.totalorder %s43_s20, %s43_s20 }
   0x4   :  { %p790_p0 = scmp.ne.s32.totalorder %s43_s20, %s789_s21  ;;  %p795_p2 = scmp.lt.s32.totalorder %s789_s21, %s789_s21 }
   0x6   :  { %p796_p3 = por %p795_p2, %p794_p1 }
   0x8   :  { %p797_p4 = pnand %p796_p3, %p790_p0 }
   0xa   :  { %800 = shalt.err (!%p797_p4)
}
   0xb   :  { %s853_s22 = smov [#allocation7]   ;;  %s854_s23 = smov [#allocation3]  }
   0xc   :  { %45 = dma.vmem_to_smem %s43_s20, 16, %s853_s22, [#allocation8]  }
   0xd   :  { %s19_s24 = sshll.u32 %s854_s23, 4  ;;  %s801_s27 = scalar_lea.hbm %s1488_s0, 512  ;;  %s20_s24 = int_to_ptr.vmem [resolvable:$true] %s19_s24 }
   0xe   :  { %p802_p5 = scmp.ne.s32.totalorder %s1488_s0, %s801_s27  ;;  %p805_p6 = scmp.lt.u32.totalorder %s801_s27, %s1488_s0 }
  0x10   :  { %p807_p7 = pnand %p805_p6, %p802_p5 }
  0x12   :  { %810 = shalt.err (!%p807_p7)
}
  0x13   :  { %s811_s6 = scalar_lea.vmem %s20_s24, 512  ;;  %p816_p9 = scmp.lt.s32.totalorder %s20_s24, %s20_s24 }
  0x14   :  { %p812_p8 = scmp.ne.s32.totalorder %s20_s24, %s811_s6  ;;  %p817_p10 = scmp.lt.s32.totalorder %s811_s6, %s811_s6 }
  0x16   :  { %p818_p11 = por %p817_p10, %p816_p9 }
  0x18   :  { %p819_p12 = pnand %p818_p11, %p812_p8 }
  0x1a   :  { %822 = shalt.err (!%p819_p12)
}
  0x1b   :  { %s855_s7 = smov 128   ;;  %s856_s8 = smov 8  }
  0x1c   :  { %25 = dma.hbm_to_vmem [thread:$0]  %s1488_s0, 512, %s20_s24, [#allocation4], %s855_s7, %s855_s7, %s856_s8  }
  0x1d   :  { %s32_s13 = sshll.u32 %s1489_s1, 4  ;;  %s52_s16 = sshll.u32 %s1491_s3, 4  ;;  %s33_s13 = int_to_ptr.vmem [resolvable:$true] %s32_s13  ;;  %s53_s16 = int_to_ptr.vmem [resolvable:$true] %s52_s16 }
  0x1e   :  { %s823_s17 = scalar_lea.vmem %s33_s13, 16  ;;  %p828_p0 = scmp.lt.s32.totalorder %s33_s13, %s33_s13 }
  0x1f   :  { %p824_p13 = scmp.ne.s32.totalorder %s33_s13, %s823_s17  ;;  %p829_p1 = scmp.lt.s32.totalorder %s823_s17, %s823_s17 }
  0x21   :  { %p830_p2 = por %p829_p1, %p828_p0 }
  0x23   :  { %p831_p3 = pnand %p830_p2, %p824_p13 }
  0x25   :  { %834 = shalt.err (!%p831_p3)
}
  0x26   :  { %s857_s18 = smov [#allocation6]   ;;  %s835_s0 = scalar_lea.vmem %s53_s16, 16 }
  0x27   :  { %35 = dma.vmem_to_smem %s33_s13, 16, %s857_s18, [#allocation5]  }
  0x28   :  { %p836_p4 = scmp.ne.s32.totalorder %s53_s16, %s835_s0  ;;  %p840_p5 = scmp.lt.s32.totalorder %s53_s16, %s53_s16 }
  0x29   :  { %p841_p6 = scmp.lt.s32.totalorder %s835_s0, %s835_s0 }
  0x2b   :  { %p842_p7 = por %p841_p6, %p840_p5 }
  0x2d   :  { %p843_p8 = pnand %p842_p7, %p836_p4 }
  0x2f   :  { %846 = shalt.err (!%p843_p8)
}
  0x30   :  { %s858_s1 = smov [#allocation9]  }
  0x31   :  { %55 = dma.vmem_to_smem %s53_s16, 16, %s858_s1, [#allocation8]  }
  0x32   :  { %847 = dma.done.wait [#allocation4], 512  }
  0x33   :  { %848 = vsyncadd [#allocation4], 4294966784 }
  0x34   :  { %849 = dma.done.wait [#allocation5], 16  }
  0x35   :  { %850 = vsyncadd [#allocation5], 4294967280 }
  0x36   :  { %851 = dma.done.wait [#allocation8], 32  }
  0x37   :  { %852 = vsyncadd [#allocation8], 4294967264 }
  0x38   :  { %70 = sfence }
  0x39   :  { %s756_s3 = sld [smem:[#allocation6 + $0x1]]  ;;  %s758_s19 = sld [smem:[#allocation6 + $0x3]]  ;;  %v912_v0 = vld [vmem:[#allocation3 + $0x10] sm:$0xff]  ;;  %v914_v1 = vld [vmem:[#allocation3] sm:$0xff]  ;;  %v916_v2 = vld [vmem:[#allocation3 + $0x18] sm:$0xff]  ;;  %vm123_vm0 = vcmask 1046528  }
  0x3a   :  { %s757_s20 = sld [smem:[#allocation6 + $0x2]]  ;;  %v918_v4 = vld [vmem:[#allocation3 + $0x8] sm:$0xff]  ;;  %s859_s21 = smov 127   ;;  %vm426_vm1 = vcmask 1045504   ;;  %vm745_vm2 = vcmask 102400   ;;  %vm743_vm3 = vcmask 105472  }
  0x3b   :  { %s761_s22 = sld [smem:[#allocation6 + $0x5]]  ;;  %s763_s23 = sld [smem:[#allocation6 + $0x7]] }
  0x3c   :  { %s762_s24 = sld [smem:[#allocation6 + $0x6]]  ;;  %s77_s25 = sld [smem:[#allocation6]] }
  0x3d   :  { %s75_s26 = sld [smem:[#allocation7]]  ;;  %s760_s27 = sld [smem:[#allocation6 + $0x4]] }
  0x3e   :  { %s759_s28 = sld [smem:[#allocation7 + $0x1]]  ;;  %s765_s2 = sld [smem:[#allocation9 + $0x2]] }
  0x3f   :  { %v88_v3 = vstv %s756_s3  ;;  %v139_v8 = vstv %s758_s19  ;;  %s764_s29 = sld [smem:[#allocation9 + $0x1]]  ;;  %s767_s30 = sld [smem:[#allocation9 + $0x4]] }
  0x40   :  { %v91_v5 = vmul.f32 %v88_v3, %v912_v0  ;;  %v89_v6 = vmul.f32 %v88_v3, %v914_v1  ;;  %v92_v7 = vmul.f32 %v88_v3, %v916_v2  ;;  %v90_v9 = vmul.f32 %v88_v3, %v918_v4  ;;  %s768_s6 = sld [smem:[#allocation9 + $0x5]]  ;;  %s773_s7 = sld [smem:[#allocation9 + $0xa]] }
  0x41   :  { %v141_v10 = vmul.f32 %v139_v8, %v918_v4  ;;  %v140_v11 = vmul.f32 %v139_v8, %v914_v1  ;;  %v143_v12 = vmul.f32 %v139_v8, %v916_v2  ;;  %v142_v13 = vmul.f32 %v139_v8, %v912_v0  ;;  %s770_s8 = sld [smem:[#allocation9 + $0x7]]  ;;  %s998_s9 = sld [smem:[#allocation9 + $0x8]] }
  0x42   :  { %101 = vrot.lane.b32.xlu1 %v91_v5, %s859_s21  ;;  %97 = vrot.lane.b32.xlu0 %v89_v6, %s859_s21  ;;  %v114_v16 = vstv %s757_s20  ;;  %v183_v24 = vstv %s761_s22  ;;  %s1055_s10 = sld [smem:[#allocation9 + $0xd]]  ;;  %s1063_s11 = sld [smem:[#allocation9 + $0xe]] }
  0x43   :  { %v149_v14 = vrot.slane %v141_v10, 1  ;;  %v148_v15 = vrot.slane %v140_v11, 1  ;;  %v152_v18 = vrot.slane %v143_v12, 1  ;;  %v151_v19 = vrot.slane %v142_v13, 1  ;;  %s1065_s12 = sld [smem:[#allocation9 + $0xb]]  ;;  %s1078_s14 = sld [smem:[#allocation9 + $0x10]] }
  0x44   :  { %v117_v20 = vmul.f32 %v114_v16, %v912_v0  ;;  %v935_v21 = vmul.f32 %v114_v16, %v916_v2  ;;  %v115_v22 = vmul.f32 %v114_v16, %v914_v1  ;;  %v939_v23 = vmul.f32 %v114_v16, %v918_v4  ;;  %s1070_s13 = sld [smem:[#allocation9 + $0x3]]  ;;  %s860_s15 = smov 126  }
  0x45   :  { %v150_v17 = vsel %vm123_vm0, %v148_v15, %v149_v14  ;;  %v153_v27 = vsel %vm123_vm0, %v151_v19, %v152_v18  ;;  %v233_v28 = vstv %s763_s23  ;;  %v185_v33 = vmul.f32 %v183_v24, %v918_v4  ;;  %s1094_s16 = sld [smem:[#allocation9 + $0x11]]  ;;  %s1171_s17 = sld [smem:[#allocation9 + $0x6]] }
  0x46   :  { %103 = vrot.lane.b32.xlu1 %v92_v7, %s859_s21  ;;  %99 = vrot.lane.b32.xlu0 %v90_v9, %s859_s21  ;;  %v127_v25 = vrot.slane %v117_v20, 1  ;;  %v128_v26 = vrot.slane %v935_v21, 1  ;;  %v124_v29 = vrot.slane %v115_v22, 1  ;;  %v125_v30 = vrot.slane %v939_v23, 1  ;;  %s1198_s18 = sld [smem:[#allocation9 + $0xc]]  ;;  %s1236_s0 = sld [smem:[#allocation9 + $0xf]] }
  0x47   :  { %v184_v34 = vmul.f32 %v183_v24, %v914_v1  ;;  %v235_v35 = vmul.f32 %v233_v28, %v918_v4  ;;  %v209_v36 = vstv %s762_s24  ;;  %v234_v37 = vmul.f32 %v233_v28, %v914_v1  ;;  %s266_s1 = sld [smem:[#allocation9]] }
  0x48   :  { %v129_v31 = vsel %vm123_vm0, %v127_v25, %v128_v26  ;;  %v126_v32 = vsel %vm123_vm0, %v124_v29, %v125_v30  ;;  %v959_v38 = vmul.f32 %v209_v36, %v918_v4  ;;  %v210_v39 = vmul.f32 %v209_v36, %v914_v1 }
  0x49   :  { %v963_v40 = vmul.f32 %v209_v36, %v916_v2  ;;  %v212_v41 = vmul.f32 %v209_v36, %v912_v0  ;;  %v187_v45 = vmul.f32 %v183_v24, %v916_v2  ;;  %v186_v46 = vmul.f32 %v183_v24, %v912_v0 }
  0x4a   :  { %156 = vrot.lane.b32.xlu1 %v149_v14, %s859_s21  ;;  %154 = vrot.lane.b32.xlu0 %v150_v17, %s859_s21  ;;  %v219_v42 = vrot.slane %v959_v38, 1  ;;  %v218_v43 = vrot.slane %v210_v39, 1  ;;  %v237_v47 = vmul.f32 %v233_v28, %v916_v2  ;;  %v243_v49 = vrot.slane %v235_v35, 1 }
  0x4b   :  { %v222_v44 = vrot.slane %v963_v40, 1  ;;  %v221_v48 = vrot.slane %v212_v41, 1  ;;  %v242_v50 = vrot.slane %v234_v37, 1  ;;  %v236_v51 = vmul.f32 %v233_v28, %v912_v0 }
  0x4c   :  { %v977_v52 = vsel %vm123_vm0, %v218_v43, %v219_v42  ;;  %v246_v55 = vrot.slane %v237_v47, 1  ;;  %v78_v58 = vstv %s77_s25  ;;  %v76_v61 = vstv %s75_s26 }
  0x4d   :  { %v982_v53 = vsel %vm123_vm0, %v221_v48, %v222_v44  ;;  %v244_v54 = vsel %vm123_vm0, %v242_v50, %v243_v49  ;;  %v245_v56 = vrot.slane %v236_v51, 1  ;;  %v81_v59 = vmul.f32 %v78_v58, %v912_v0 }
  0x4e   :  { %160 = vrot.lane.b32.xlu1 %v152_v18, %s859_s21  ;;  %158 = vrot.lane.b32.xlu0 %v153_v27, %s859_s21  ;;  %v79_v60 = vmul.f32 %v78_v58, %v914_v1  ;;  %v80_v3 = vmul.f32 %v78_v58, %v918_v4  ;;  %v82_v5 = vmul.f32 %v78_v58, %v916_v2  ;;  %v173_v11 = vstv %s760_s27 }
  0x4f   :  { %v247_v57 = vsel %vm123_vm0, %v245_v56, %v246_v55  ;;  %v85_v62 = vadd.f32 %v81_v59, %v76_v61  ;;  %v175_v17 = vmul.f32 %v173_v11, %v918_v4  ;;  %v174_v18 = vmul.f32 %v173_v11, %v914_v1 }
  0x50   :  { %v83_v63 = vadd.f32 %v79_v60, %v76_v61  ;;  %v84_v10 = vadd.f32 %v80_v3, %v76_v61  ;;  %v86_v14 = vadd.f32 %v82_v5, %v76_v61  ;;  %v171_v20 = vstv %s759_s28 }
  0x51   :  { %v177_v22 = vmul.f32 %v173_v11, %v916_v2  ;;  %v176_v24 = vmul.f32 %v173_v11, %v912_v0  ;;  %v303_v4 = vstv %s765_s2  ;;  %v353_v35 = vstv %s767_s30 }
  0x52   :  { %194 = vrot.lane.b32.xlu1 %v185_v33, %s859_s21  ;;  %192 = vrot.lane.b32.xlu0 %v184_v34, %s859_s21  ;;  %v178_v33 = vadd.f32 %v174_v18, %v171_v20  ;;  %v385_v36 = vstv %s768_s6  ;;  %v1010_v0 = vstv %s773_s7 }
  0x53   :  { %v1008_v37 = vadd.f32 %v177_v22, %v171_v20  ;;  %v180_v2 = vadd.f32 %v176_v24, %v171_v20  ;;  %v442_v39 = vstv %s770_s8 }
  0x56   :  { %198 = vrot.lane.b32.xlu1 %v187_v45, %s859_s21  ;;  %196 = vrot.lane.b32.xlu0 %v186_v46, %s859_s21 }
  0x5a   :  { %250 = vrot.lane.b32.xlu1 %v243_v49, %s859_s21  ;;  %248 = vrot.lane.b32.xlu0 %v244_v54, %s859_s21  ;;  %v474_v54 = vstv %s998_s9 }
  0x5e   :  { %254 = vrot.lane.b32.xlu1 %v246_v55, %s859_s21  ;;  %252 = vrot.lane.b32.xlu0 %v247_v57, %s859_s21 }
  0xb4   :  { %v102_v6 = vpop.permute.xlu1 %101  ;;  %v98_v7 = vpop.permute.xlu0 %97 }
  0xb5   :  { %v111_v8 = vadd.f32 %v102_v6, %v85_v62  ;;  %v109_v9 = vadd.f32 %v98_v7, %v83_v63 }
  0xb7   :  { %v136_v12 = vadd.f32 %v129_v31, %v111_v8  ;;  %v134_v13 = vadd.f32 %v126_v32, %v109_v9  ;;  %v277_v31 = vstv %s764_s29  ;;  %v179_v32 = vadd.f32 %v175_v17, %v171_v20 }
  0xb8   :  { %v104_v15 = vpop.permute.xlu1 %103  ;;  %v100_v16 = vpop.permute.xlu0 %99 }
  0xb9   :  { %v110_v19 = vadd.f32 %v100_v16, %v84_v10  ;;  %v112_v25 = vadd.f32 %v104_v15, %v86_v14 }
  0xbb   :  { %v135_v27 = vadd.f32 %v125_v30, %v110_v19  ;;  %v137_v23 = vadd.f32 %v128_v26, %v112_v25 }
  0xbc   :  { %v157_v28 = vpop.permute.xlu1 %156  ;;  %v155_v29 = vpop.permute.xlu0 %154 }
  0xbd   :  { %v1004_v34 = vadd.f32 %v157_v28, %v135_v27  ;;  %v1006_v1 = vadd.f32 %v155_v29, %v134_v13 }
  0xbf   :  { %v279_v30 = vmul.f32 %v277_v31, %v1004_v34  ;;  %v278_v41 = vmul.f32 %v277_v31, %v1006_v1  ;;  %v305_v43 = vmul.f32 %v303_v4, %v1004_v34  ;;  %v1018_v47 = vmul.f32 %v353_v35, %v1004_v34 }
  0xc0   :  { %v161_v45 = vpop.permute.xlu1 %160  ;;  %v159_v46 = vpop.permute.xlu0 %158  ;;  %v354_v48 = vmul.f32 %v353_v35, %v1006_v1  ;;  %v1022_v49 = vmul.f32 %v385_v36, %v1004_v34  ;;  %v386_v21 = vmul.f32 %v385_v36, %v1006_v1  ;;  %v1032_v51 = vmul.f32 %v442_v39, %v1004_v34 }
  0xc1   :  { %v1025_v26 = vadd.f32 %v161_v45, %v137_v23  ;;  %v1027_v50 = vadd.f32 %v159_v46, %v136_v12  ;;  %288 = vrot.lane.b32.xlu1 %v279_v30, %s859_s21  ;;  %286 = vrot.lane.b32.xlu0 %v278_v41, %s859_s21  ;;  %v363_v55 = vrot.slane %v1018_v47, 1  ;;  %v304_v61 = vmul.f32 %v303_v4, %v1006_v1 }
  0xc2   :  { %v362_v56 = vrot.slane %v354_v48, 1  ;;  %v395_v57 = vrot.slane %v1022_v49, 1  ;;  %v394_v58 = vrot.slane %v386_v21, 1  ;;  %v1509_v12 = vrot.slane %v1032_v51, 2 }
  0xc3   :  { %v281_v59 = vmul.f32 %v277_v31, %v1025_v26  ;;  %v280_v60 = vmul.f32 %v277_v31, %v1027_v50  ;;  %v307_v62 = vmul.f32 %v303_v4, %v1025_v26  ;;  %v1047_v6 = vmul.f32 %v353_v35, %v1025_v26 }
  0xc4   :  { %v195_v63 = vpop.permute.xlu1 %194  ;;  %v193_v3 = vpop.permute.xlu0 %192  ;;  %v1044_v5 = vsel %vm123_vm0, %v362_v56, %v363_v55  ;;  %v356_v7 = vmul.f32 %v353_v35, %v1027_v50  ;;  %v1053_v8 = vsel %vm123_vm0, %v394_v58, %v395_v57  ;;  %v1060_v11 = vmul.f32 %v385_v36, %v1025_v26 }
  0xc5   :  { %v205_v9 = vadd.f32 %v195_v63, %v179_v32  ;;  %v204_v10 = vadd.f32 %v193_v3, %v178_v33  ;;  %292 = vrot.lane.b32.xlu1 %v281_v59, %s859_s21  ;;  %290 = vrot.lane.b32.xlu0 %v280_v60, %s859_s21  ;;  %v366_v13 = vrot.slane %v1047_v6, 1  ;;  %v388_v15 = vmul.f32 %v385_v36, %v1027_v50 }
  0xc6   :  { %v365_v14 = vrot.slane %v356_v7, 1  ;;  %v443_v16 = vmul.f32 %v442_v39, %v1006_v1  ;;  %v306_v18 = vmul.f32 %v303_v4, %v1027_v50  ;;  %v398_v19 = vrot.slane %v1060_v11, 1 }
  0xc7   :  { %v228_v17 = vadd.f32 %v977_v52, %v204_v10  ;;  %v1076_v20 = vmul.f32 %v442_v39, %v1025_v26  ;;  %v397_v27 = vrot.slane %v388_v15, 1  ;;  %v445_v52 = vmul.f32 %v442_v39, %v1027_v50 }
  0xc8   :  { %v199_v22 = vpop.permute.xlu1 %198  ;;  %v197_v24 = vpop.permute.xlu0 %196  ;;  %v1083_v25 = vsel %vm123_vm0, %v365_v14, %v366_v13  ;;  %v451_v28 = vrot.slane %v443_v16, 2  ;;  %v229_v31 = vadd.f32 %v219_v42, %v205_v9  ;;  %v1092_v33 = vmul.f32 %v474_v54, %v1004_v34 }
  0xc9   :  { %v206_v29 = vadd.f32 %v197_v24, %v180_v2  ;;  %314 = vrot.lane.b32.xlu1 %v305_v43, %s860_s15  ;;  %312 = vrot.lane.b32.xlu0 %v304_v61, %s860_s15  ;;  %v1508_v32 = vrot.slane %v1076_v20, 2  ;;  %v1099_v4 = vsel %vm123_vm0, %v397_v27, %v398_v19  ;;  %v454_v38 = vrot.slane %v445_v52, 2 }
  0xca   :  { %v1104_v35 = vsel %vm426_vm1, %v451_v28, %v1509_v12  ;;  %v475_v42 = vmul.f32 %v474_v54, %v1006_v1  ;;  %v207_v36 = vadd.f32 %v199_v22, %v1008_v37  ;;  %v1504_v39 = vrot.slane %v1092_v33, 2 }
  0xcb   :  { %v230_v2 = vadd.f32 %v982_v53, %v206_v29  ;;  %v1111_v23 = vmul.f32 %v474_v54, %v1025_v26  ;;  %v1116_v43 = vsel %vm426_vm1, %v454_v38, %v1508_v32  ;;  %v477_v37 = vmul.f32 %v474_v54, %v1027_v50 }
  0xcc   :  { %v251_v30 = vpop.permute.xlu1 %250  ;;  %v249_v41 = vpop.permute.xlu0 %248  ;;  %v483_v45 = vrot.slane %v475_v42, 2  ;;  %v592_v46 = vstv %s1055_s10  ;;  %v624_v56 = vstv %s1063_s11  ;;  %v1129_v58 = vstv %s1065_s12 }
  0xcd   :  { %v1120_v48 = vadd.f32 %v251_v30, %v229_v31  ;;  %v1122_v53 = vadd.f32 %v249_v41, %v228_v17  ;;  %318 = vrot.lane.b32.xlu1 %v307_v62, %s860_s15  ;;  %316 = vrot.lane.b32.xlu0 %v306_v18, %s860_s15  ;;  %v1503_v21 = vrot.slane %v1111_v23, 2  ;;  %v486_v54 = vrot.slane %v477_v37, 2 }
  0xce   :  { %v1134_v59 = vsel %vm426_vm1, %v483_v45, %v1504_v39  ;;  %v1137_v60 = vstv %s1070_s13  ;;  %v231_v61 = vadd.f32 %v222_v44, %v207_v36  ;;  %v680_v3 = vstv %s1078_s14 }
  0xcf   :  { %v518_v62 = vmul.f32 %v1010_v0, %v1120_v48  ;;  %v517_v63 = vmul.f32 %v1010_v0, %v1122_v53  ;;  %v1149_v10 = vsel %vm426_vm1, %v486_v54, %v1503_v21  ;;  %v1152_v14 = vmul.f32 %v592_v46, %v1120_v48 }
  0xd0   :  { %v255_v7 = vpop.permute.xlu1 %254  ;;  %v253_v9 = vpop.permute.xlu0 %252  ;;  %v593_v40 = vmul.f32 %v592_v46, %v1122_v53  ;;  %v1156_v44 = vmul.f32 %v624_v56, %v1120_v48  ;;  %v625_v17 = vmul.f32 %v624_v56, %v1122_v53  ;;  %v712_v18 = vstv %s1094_s16 }
  0xd1   :  { %v1158_v15 = vadd.f32 %v255_v7, %v231_v61  ;;  %v1160_v16 = vadd.f32 %v253_v9, %v230_v2  ;;  %527 = vrot.lane.b32.xlu1 %v518_v62, %s859_s21  ;;  %525 = vrot.lane.b32.xlu0 %v517_v63, %s859_s21  ;;  %v1501_v22 = vrot.slane %v1152_v14, 1  ;;  %v1169_v28 = vmul.f32 %v680_v3, %v1120_v48 }
  0xd2   :  { %v601_v24 = vrot.slane %v593_v40, 1  ;;  %v1498_v27 = vrot.slane %v1156_v44, 1  ;;  %v544_v31 = vmul.f32 %v1129_v58, %v1120_v48  ;;  %v543_v38 = vmul.f32 %v1129_v58, %v1122_v53 }
  0xd3   :  { %v520_v52 = vmul.f32 %v1010_v0, %v1158_v15  ;;  %v519_v29 = vmul.f32 %v1010_v0, %v1160_v16  ;;  %v1187_v36 = vmul.f32 %v592_v46, %v1158_v15  ;;  %v595_v2 = vmul.f32 %v592_v46, %v1160_v16 }
  0xd4   :  { %v1184_v42 = vsel %vm123_vm0, %v601_v24, %v1501_v22  ;;  %v633_v30 = vrot.slane %v625_v17, 1  ;;  %v1193_v0 = vmul.f32 %v624_v56, %v1158_v15  ;;  %v627_v41 = vmul.f32 %v624_v56, %v1160_v16 }
  0xd5   :  { %531 = vrot.lane.b32.xlu1 %v520_v52, %s859_s21  ;;  %529 = vrot.lane.b32.xlu0 %v519_v29, %s859_s21  ;;  %v1494_v45 = vrot.slane %v1169_v28, 2  ;;  %v681_v37 = vmul.f32 %v680_v3, %v1122_v53  ;;  %v1499_v54 = vrot.slane %v1187_v36, 1  ;;  %v604_v61 = vrot.slane %v595_v2, 1 }
  0xd6   :  { %v1204_v46 = vsel %vm123_vm0, %v633_v30, %v1498_v27  ;;  %v1207_v62 = vmul.f32 %v680_v3, %v1158_v15  ;;  %v1497_v63 = vrot.slane %v1193_v0, 1  ;;  %v636_v56 = vrot.slane %v627_v41, 1 }
  0xd7   :  { %v689_v7 = vrot.slane %v681_v37, 2  ;;  %v683_v9 = vmul.f32 %v680_v3, %v1160_v16  ;;  %v1214_v40 = vsel %vm123_vm0, %v604_v61, %v1499_v54  ;;  %v1218_v24 = vmul.f32 %v712_v18, %v1120_v48 }
  0xd8   :  { %v1496_v17 = vrot.slane %v1207_v62, 2  ;;  %v713_v52 = vmul.f32 %v712_v18, %v1122_v53  ;;  %v1226_v3 = vsel %vm123_vm0, %v636_v56, %v1497_v63  ;;  %v1234_v30 = vmul.f32 %v712_v18, %v1158_v15 }
  0xd9   :  { %553 = vrot.lane.b32.xlu1 %v544_v31, %s860_s15  ;;  %551 = vrot.lane.b32.xlu0 %v543_v38, %s860_s15  ;;  %v1231_v29 = vsel %vm426_vm1, %v689_v7, %v1494_v45  ;;  %v692_v2 = vrot.slane %v683_v9, 2  ;;  %v1495_v31 = vrot.slane %v1218_v24, 2  ;;  %v715_v41 = vmul.f32 %v712_v18, %v1160_v16 }
  0xda   :  { %v721_v38 = vrot.slane %v713_v52, 2  ;;  %v417_v37 = vstv %s1171_s17  ;;  %v546_v61 = vmul.f32 %v1129_v58, %v1158_v15  ;;  %v545_v56 = vmul.f32 %v1129_v58, %v1160_v16 }
  0xdb   :  { %v1248_v7 = vsel %vm426_vm1, %v692_v2, %v1496_v17  ;;  %v1500_v9 = vrot.slane %v1234_v30, 2  ;;  %v724_v18 = vrot.slane %v715_v41, 2  ;;  %v1258_v45 = vmul.f32 %v1137_v60, %v1004_v34 }
  0xdc   :  { %v1254_v52 = vsel %vm426_vm1, %v721_v38, %v1495_v31  ;;  %v330_v58 = vmul.f32 %v1137_v60, %v1006_v1  ;;  %v1266_v2 = vmul.f32 %v1137_v60, %v1025_v26  ;;  %v332_v38 = vmul.f32 %v1137_v60, %v1027_v50 }
  0xdd   :  { %557 = vrot.lane.b32.xlu1 %v546_v61, %s860_s15  ;;  %555 = vrot.lane.b32.xlu0 %v545_v56, %s860_s15  ;;  %v568_v31 = vstv %s1198_s18  ;;  %v1274_v41 = vsel %vm426_vm1, %v724_v18, %v1500_v9  ;;  %v1502_v17 = vrot.slane %v1258_v45, 1  ;;  %v1278_v61 = vmul.f32 %v417_v37, %v1004_v34 }
  0xde   :  { %v338_v63 = vrot.slane %v330_v58, 1  ;;  %v1506_v56 = vrot.slane %v1266_v2, 1  ;;  %v341_v27 = vrot.slane %v332_v38, 1  ;;  %v418_v54 = vmul.f32 %v417_v37, %v1006_v1 }
  0xdf   :  { %v1283_v60 = vmul.f32 %v417_v37, %v1025_v26  ;;  %v1505_v9 = vrot.slane %v1278_v61, 2  ;;  %v420_v58 = vmul.f32 %v417_v37, %v1027_v50  ;;  %v1305_v39 = vmul.f32 %v568_v31, %v1120_v48 }
  0xe0   :  { %v1288_v18 = vsel %vm123_vm0, %v338_v63, %v1502_v17  ;;  %v1300_v38 = vsel %vm123_vm0, %v341_v27, %v1506_v56  ;;  %v427_v22 = vrot.slane %v418_v54, 2  ;;  %v656_v17 = vstv %s1236_s0 }
  0xe1   :  { %370 = vrot.lane.b32.xlu1 %v363_v55, %s859_s21  ;;  %368 = vrot.lane.b32.xlu0 %v1044_v5, %s859_s21  ;;  %v1507_v63 = vrot.slane %v1283_v60, 2  ;;  %v430_v21 = vrot.slane %v420_v58, 2  ;;  %v569_v55 = vmul.f32 %v568_v31, %v1122_v53  ;;  %v1314_v5 = vmul.f32 %v568_v31, %v1158_v15 }
  0xe2   :  { %v1310_v47 = vsel %vm426_vm1, %v427_v22, %v1505_v9  ;;  %v571_v27 = vmul.f32 %v568_v31, %v1160_v16  ;;  %v578_v37 = vrot.slane %v1305_v39, 1  ;;  %v1324_v58 = vmul.f32 %v656_v17, %v1120_v48 }
  0xe3   :  { %v1320_v54 = vsel %vm426_vm1, %v430_v21, %v1507_v63  ;;  %v657_v22 = vmul.f32 %v656_v17, %v1122_v53  ;;  %v577_v31 = vrot.slane %v569_v55, 1  ;;  %v581_v9 = vrot.slane %v1314_v5, 1 }
  0xe4   :  { %v580_v56 = vrot.slane %v571_v27, 1  ;;  %v1334_v21 = vmul.f32 %v656_v17, %v1158_v15  ;;  %v666_v63 = vrot.slane %v1324_v58, 2  ;;  %v659_v12 = vmul.f32 %v656_v17, %v1160_v16 }
  0xe5   :  { %374 = vrot.lane.b32.xlu1 %v366_v13, %s859_s21  ;;  %372 = vrot.lane.b32.xlu0 %v1083_v25, %s859_s21  ;;  %v665_v32 = vrot.slane %v657_v22, 2  ;;  %v1341_v6 = vsel %vm123_vm0, %v577_v31, %v578_v37  ;;  %v1511_v49 = vrot.slane %v1076_v20, 2  ;;  %v1515_v11 = vrot.slane %v1187_v36, 1 }
  0xe6   :  { %v1346_v13 = vsel %vm123_vm0, %v580_v56, %v581_v9  ;;  %v669_v25 = vrot.slane %v1334_v21, 2  ;;  %v668_v27 = vrot.slane %v659_v12, 2  ;;  %v1510_v12 = vrot.slane %v1032_v51, 2 }
  0xe7   :  { %v1352_v55 = vsel %vm426_vm1, %v665_v32, %v666_v63  ;;  %v1513_v51 = vrot.slane %v1111_v23, 2  ;;  %v1517_v20 = vrot.slane %v1193_v0, 1  ;;  %v1518_v32 = vrot.slane %v1169_v28, 2 }
  0xe8   :  { %v1362_v17 = vsel %vm426_vm1, %v668_v27, %v669_v25  ;;  %v267_v23 = vstv %s266_s1 }
  0xe9   :  { %402 = vrot.lane.b32.xlu1 %v395_v57, %s860_s15  ;;  %400 = vrot.lane.b32.xlu0 %v1053_v8, %s860_s15  ;;  %v1512_v57 = vrot.slane %v1092_v33, 2  ;;  %v1514_v8 = vrot.slane %v1152_v14, 1  ;;  %v1519_v33 = vrot.slane %v1207_v62, 2  ;;  %v265_v14 = vstv %s1492_s4  ;;  %s772_s4 = sld [smem:[#allocation9 + $0x9]] }
  0xea   :  { %v270_v36 = vmul.f32 %v267_v23, %v1027_v50 }
  0xed   :  { %406 = vrot.lane.b32.xlu1 %v398_v19, %s860_s15  ;;  %404 = vrot.lane.b32.xlu0 %v1099_v4, %s860_s15  ;;  %v1516_v19 = vrot.slane %v1156_v44, 1  ;;  %v1520_v4 = vrot.slane %v1218_v24, 2 }
  0xf1   :  { %459 = vrot.lane.b32.xlu1 %v1510_v12, %s859_s21  ;;  %457 = vrot.lane.b32.xlu0 %v1104_v35, %s859_s21  ;;  %v1521_v35 = vrot.slane %v1234_v30, 2 }
  0xf5   :  { %463 = vrot.lane.b32.xlu1 %v1511_v49, %s859_s21  ;;  %461 = vrot.lane.b32.xlu0 %v1116_v43, %s859_s21 }
  0xf9   :  { %491 = vrot.lane.b32.xlu1 %v1512_v57, %s860_s15  ;;  %489 = vrot.lane.b32.xlu0 %v1134_v59, %s860_s15 }
  0xfd   :  { %495 = vrot.lane.b32.xlu1 %v1513_v51, %s860_s15  ;;  %493 = vrot.lane.b32.xlu0 %v1149_v10, %s860_s15  ;;  %v268_v10 = vmul.f32 %v267_v23, %v1006_v1 }
 0x101   :  { %609 = vrot.lane.b32.xlu1 %v1514_v8, %s859_s21  ;;  %607 = vrot.lane.b32.xlu0 %v1184_v42, %s859_s21  ;;  %v272_v42 = vadd.f32 %v268_v10, %v265_v14 }
 0x105   :  { %613 = vrot.lane.b32.xlu1 %v1515_v11, %s859_s21  ;;  %611 = vrot.lane.b32.xlu0 %v1214_v40, %s859_s21  ;;  %v274_v40 = vadd.f32 %v270_v36, %v265_v14 }
 0x109   :  { %641 = vrot.lane.b32.xlu1 %v1516_v19, %s860_s15  ;;  %639 = vrot.lane.b32.xlu0 %v1204_v46, %s860_s15 }
 0x10d   :  { %645 = vrot.lane.b32.xlu1 %v1517_v20, %s860_s15  ;;  %643 = vrot.lane.b32.xlu0 %v1226_v3, %s860_s15 }
 0x111   :  { %697 = vrot.lane.b32.xlu1 %v1518_v32, %s859_s21  ;;  %695 = vrot.lane.b32.xlu0 %v1231_v29, %s859_s21 }
 0x115   :  { %701 = vrot.lane.b32.xlu1 %v1519_v33, %s859_s21  ;;  %699 = vrot.lane.b32.xlu0 %v1248_v7, %s859_s21 }
 0x119   :  { %729 = vrot.lane.b32.xlu1 %v1520_v4, %s860_s15  ;;  %727 = vrot.lane.b32.xlu0 %v1254_v52, %s860_s15 }
 0x11d   :  { %733 = vrot.lane.b32.xlu1 %v1521_v35, %s860_s15  ;;  %731 = vrot.lane.b32.xlu0 %v1274_v41, %s860_s15 }
 0x133   :  { %v289_v43 = vpop.permute.xlu1 %288  ;;  %v287_v59 = vpop.permute.xlu0 %286 }
 0x134   :  { %v298_v0 = vadd.f32 %v287_v59, %v272_v42 }
 0x137   :  { %v293_v44 = vpop.permute.xlu1 %292  ;;  %v291_v28 = vpop.permute.xlu0 %290 }
 0x138   :  { %v300_v3 = vadd.f32 %v291_v28, %v274_v40 }
 0x13b   :  { %v315_v46 = vpop.permute.xlu1 %314  ;;  %v313_v62 = vpop.permute.xlu0 %312 }
 0x13c   :  { %v324_v24 = vadd.f32 %v313_v62, %v298_v0 }
 0x13e   :  { %v348_v29 = vadd.f32 %v1288_v18, %v324_v24  ;;  %v269_v18 = vmul.f32 %v267_v23, %v1004_v34  ;;  %v1522_v34 = vrot.slane %v1258_v45, 1  ;;  %v506_v45 = vstv %s772_s4 }
 0x13f   :  { %v319_v30 = vpop.permute.xlu1 %318  ;;  %v317_v7 = vpop.permute.xlu0 %316 }
 0x140   :  { %v326_v1 = vadd.f32 %v317_v7, %v300_v3  ;;  %v273_v19 = vadd.f32 %v269_v18, %v265_v14 }
 0x142   :  { %v350_v52 = vadd.f32 %v1300_v38, %v326_v1  ;;  %v271_v38 = vmul.f32 %v267_v23, %v1025_v26  ;;  %v299_v20 = vadd.f32 %v289_v43, %v273_v19 }
 0x143   :  { %v528_v41 = vpop.permute.xlu1 %527  ;;  %v526_v56 = vpop.permute.xlu0 %525 }
 0x144   :  { %v275_v35 = vadd.f32 %v271_v38, %v265_v14  ;;  %v325_v59 = vadd.f32 %v315_v46, %v299_v20  ;;  %v1523_v14 = vrot.slane %v1266_v2, 1  ;;  %v1525_v38 = vrot.slane %v1283_v60, 2 }
 0x146   :  { %v301_v28 = vadd.f32 %v293_v44, %v275_v35  ;;  %v349_v24 = vadd.f32 %v1522_v34, %v325_v59 }
 0x147   :  { %v1436_v22 = vpop.permute.xlu1 %531  ;;  %v1438_v31 = vpop.permute.xlu0 %529 }
 0x148   :  { %v327_v40 = vadd.f32 %v319_v30, %v301_v28  ;;  %v1524_v30 = vrot.slane %v1278_v61, 2  ;;  %v510_v61 = vmul.f32 %v506_v45, %v1158_v15  ;;  %v509_v28 = vmul.f32 %v506_v45, %v1160_v16 }
 0x14a   :  { %v351_v46 = vadd.f32 %v1523_v14, %v327_v40 }
 0x14b   :  { %v554_v50 = vpop.permute.xlu1 %553  ;;  %v552_v27 = vpop.permute.xlu0 %551 }
 0x14f   :  { %v1440_v12 = vpop.permute.xlu1 %557  ;;  %v1442_v49 = vpop.permute.xlu0 %555 }
 0x153   :  { %v371_v57 = vpop.permute.xlu1 %370  ;;  %v369_v51 = vpop.permute.xlu0 %368 }
 0x154   :  { %v380_v32 = vadd.f32 %v369_v51, %v348_v29  ;;  %v381_v26 = vadd.f32 %v371_v57, %v349_v24  ;;  %v508_v57 = vmul.f32 %v506_v45, %v1120_v48 }
 0x157   :  { %v375_v8 = vpop.permute.xlu1 %374  ;;  %v373_v11 = vpop.permute.xlu0 %372 }
 0x158   :  { %v382_v42 = vadd.f32 %v373_v11, %v350_v52  ;;  %v383_v7 = vadd.f32 %v375_v8, %v351_v46 }
 0x15b   :  { %v403_v33 = vpop.permute.xlu1 %402  ;;  %v401_v4 = vpop.permute.xlu0 %400 }
 0x15c   :  { %v412_v10 = vadd.f32 %v401_v4, %v380_v32  ;;  %v413_v44 = vadd.f32 %v403_v33, %v381_v26  ;;  %v507_v32 = vmul.f32 %v506_v45, %v1122_v53 }
 0x15e   :  { %v437_v36 = vadd.f32 %v1310_v47, %v412_v10  ;;  %v438_v51 = vadd.f32 %v1524_v30, %v413_v44 }
 0x15f   :  { %v407_v0 = vpop.permute.xlu1 %406  ;;  %v405_v62 = vpop.permute.xlu0 %404 }
 0x160   :  { %v414_v3 = vadd.f32 %v405_v62, %v382_v42  ;;  %v415_v52 = vadd.f32 %v407_v0, %v383_v7 }
 0x162   :  { %v439_v23 = vadd.f32 %v1320_v54, %v414_v3  ;;  %v440_v20 = vadd.f32 %v1525_v38, %v415_v52 }
 0x163   :  { %v460_v43 = vpop.permute.xlu1 %459  ;;  %v458_v29 = vpop.permute.xlu0 %457 }
 0x164   :  { %v470_v18 = vadd.f32 %v460_v43, %v438_v51  ;;  %v469_v11 = vadd.f32 %v458_v29, %v437_v36 }
 0x167   :  { %v464_v1 = vpop.permute.xlu1 %463  ;;  %v462_v47 = vpop.permute.xlu0 %461 }
 0x168   :  { %v472_v33 = vadd.f32 %v464_v1, %v440_v20  ;;  %v471_v4 = vadd.f32 %v462_v47, %v439_v23 }
 0x16b   :  { %v492_v19 = vpop.permute.xlu1 %491  ;;  %v490_v54 = vpop.permute.xlu0 %489 }
 0x16c   :  { %v502_v2 = vadd.f32 %v492_v19, %v470_v18  ;;  %v501_v8 = vadd.f32 %v490_v54, %v469_v11 }
 0x16e   :  { %v512_v35 = vadd.f32 %v508_v57, %v502_v2  ;;  %v511_v59 = vadd.f32 %v507_v32, %v501_v8 }
 0x16f   :  { %v496_v10 = vpop.permute.xlu1 %495  ;;  %v494_v42 = vpop.permute.xlu0 %493 }
 0x170   :  { %v538_v48 = vadd.f32 %v528_v41, %v512_v35  ;;  %v537_v36 = vadd.f32 %v526_v56, %v511_v59  ;;  %v504_v0 = vadd.f32 %v496_v10, %v472_v33  ;;  %v503_v62 = vadd.f32 %v494_v42, %v471_v4 }
 0x172   :  { %v514_v60 = vadd.f32 %v510_v61, %v504_v0  ;;  %v513_v40 = vadd.f32 %v509_v28, %v503_v62  ;;  %v564_v34 = vadd.f32 %v554_v50, %v538_v48  ;;  %v563_v24 = vadd.f32 %v552_v27, %v537_v36 }
 0x173   :  { %v610_v53 = vpop.permute.xlu1 %609  ;;  %v608_v3 = vpop.permute.xlu0 %607 }
 0x174   :  { %v540_v26 = vadd.f32 %v1436_v22, %v514_v60  ;;  %v539_v23 = vadd.f32 %v1438_v31, %v513_v40  ;;  %v588_v15 = vadd.f32 %v578_v37, %v564_v34  ;;  %v587_v16 = vadd.f32 %v1341_v6, %v563_v24 }
 0x176   :  { %v566_v41 = vadd.f32 %v1440_v12, %v540_v26  ;;  %v565_v56 = vadd.f32 %v1442_v49, %v539_v23  ;;  %v620_v14 = vadd.f32 %v610_v53, %v588_v15  ;;  %v619_v22 = vadd.f32 %v608_v3, %v587_v16 }
 0x177   :  { %v614_v43 = vpop.permute.xlu1 %613  ;;  %v612_v29 = vpop.permute.xlu0 %611 }
 0x178   :  { %v590_v50 = vadd.f32 %v581_v9, %v566_v41  ;;  %v589_v27 = vadd.f32 %v1346_v13, %v565_v56 }
 0x17a   :  { %v622_v37 = vadd.f32 %v614_v43, %v590_v50  ;;  %v621_v7 = vadd.f32 %v612_v29, %v589_v27 }
 0x17b   :  { %v642_v46 = vpop.permute.xlu1 %641  ;;  %v640_v31 = vpop.permute.xlu0 %639 }
 0x17c   :  { %v652_v44 = vadd.f32 %v642_v46, %v620_v14  ;;  %v651_v39 = vadd.f32 %v640_v31, %v619_v22 }
 0x17e   :  { %v676_v6 = vadd.f32 %v666_v63, %v652_v44  ;;  %v675_v12 = vadd.f32 %v1352_v55, %v651_v39 }
 0x17f   :  { %v646_v49 = vpop.permute.xlu1 %645  ;;  %v644_v1 = vpop.permute.xlu0 %643 }
 0x180   :  { %v654_v47 = vadd.f32 %v646_v49, %v622_v37  ;;  %v653_v5 = vadd.f32 %v644_v1, %v621_v7 }
 0x182   :  { %v678_v9 = vadd.f32 %v669_v25, %v654_v47  ;;  %v677_v13 = vadd.f32 %v1362_v17, %v653_v5 }
 0x183   :  { %v698_v52 = vpop.permute.xlu1 %697  ;;  %v696_v30 = vpop.permute.xlu0 %695 }
 0x184   :  { %v708_v18 = vadd.f32 %v698_v52, %v676_v6  ;;  %v707_v11 = vadd.f32 %v696_v30, %v675_v12 }
 0x187   :  { %v702_v51 = vpop.permute.xlu1 %701  ;;  %v700_v45 = vpop.permute.xlu0 %699 }
 0x188   :  { %v710_v19 = vadd.f32 %v702_v51, %v678_v9  ;;  %v709_v54 = vadd.f32 %v700_v45, %v677_v13 }
 0x18b   :  { %v730_v58 = vpop.permute.xlu1 %729  ;;  %v728_v63 = vpop.permute.xlu0 %727 }
 0x18c   :  { %v740_v55 = vadd.f32 %v730_v58, %v708_v18  ;;  %v739_v57 = vadd.f32 %v728_v63, %v707_v11 }
 0x18e   :  { %746 = vst.msk [vmem:[%s1493_s5 + $0x8] sm:$0x1f] %vm745_vm2, %v740_v55 }
 0x18f   :  { %744 = vst.msk [vmem:[%s1493_s5] sm:$0xff] %vm743_vm3, %v739_v57  ;;  %v734_v21 = vpop.permute.xlu1 %733  ;;  %v732_v25 = vpop.permute.xlu0 %731 }
 0x190   :  { %v742_v17 = vadd.f32 %v734_v21, %v710_v19  ;;  %v741_v38 = vadd.f32 %v732_v25, %v709_v54 }
 0x192   :  { %748 = vst.msk [vmem:[%s1493_s5 + $0x18] sm:$0x1f] %vm745_vm2, %v742_v17 }
 0x193   :  { %747 = vst.msk [vmem:[%s1493_s5 + $0x10] sm:$0xff] %vm743_vm3, %v741_v38 }
 0x194   :  { %753 = vsyncpa [#allocation4], 1 }
 0x195   :  { %754 = vsyncpa [#allocation5], 1 }
 0x196   :  { %755 = vsyncpa [#allocation8], 1 }

</bundles_post_ra>
